<compile_context>
chip_gen: v7x
topology: tpu7x:2x2x1
jax: 0.10.0
libtpu: 0.0.40
codegen_flags: <defaults>
</compile_context>

<pallas_src>
import jax
import jax.numpy as jnp
from jax.experimental import pallas as pl
from jax.experimental.pallas import tpu as pltpu

LANE = 128
SUBLANE = 8


def _round_up(n, m):
    return ((n + m - 1) // m) * m


def _pick_tm(B, tm_max=4096):
    """Lane-dense batch tile (multiple of 128)."""
    if B > tm_max:
        return tm_max                           # long grid, tiles at the cap
    if B > 512:
        # >= 2 grid steps so both v7x TensorCores get a share of the batch.
        return _round_up(pl.cdiv(B, 2), LANE)
    return _round_up(B, LANE)                   # one (possibly ragged) tile


def valuenet_kernel(xt_ref, w1t_ref, b1_ref, w2_ref, b2_ref, o_ref):
    # fc1 on the MXU: h^T = W1^T @ x^T -> [hidden_p, tm], f32 accumulate.
    ht = jnp.dot(w1t_ref[...], xt_ref[...], preferred_element_type=jnp.float32)
    # bias + ReLU on the VPU; b1 is a [hidden_p, 1] column broadcast over lanes.
    ht = jnp.maximum(ht + b1_ref[...], 0.0)
    # fc2 (out_features == 1): VPU multiply by the w2 column + XLU sublane
    # reduction over hidden -> lane-dense [1, tm] row; add the SMEM scalar b2.
    out = jnp.sum(ht * w2_ref[...], axis=0, keepdims=True) + b2_ref[0]
    o_ref[...] = out.astype(o_ref.dtype)


def valuenet_forward(x, w1, b1, w2, b2, *, tm=None):
    """ValueNet forward: ReLU(x @ W1 + b1) @ W2 + b2 (f32 throughout).

    x : [B, in] f32
    w1: [in, hidden]      (transposed vs. PyTorch nn.Linear)
    b1: [hidden] or [1, hidden]
    w2: [hidden, 1]
    b2: [1] or [1, 1]
    returns [B, 1] f32
    """
    B, in_size = x.shape
    hidden = w1.shape[1]
    out_size = w2.shape[1]
    if out_size != 1:
        raise ValueError("kernel specializes fc2 to out_features == 1")

    hidden_p = _round_up(hidden, SUBLANE)       # hidden on sublanes: 80 -> 80
    if tm is None:
        tm = _pick_tm(B)
    grid = (pl.cdiv(B, tm),)

    # Layout plumbing only (no batch pad, no dtype cast of the x stream):
    xt = jnp.transpose(x.astype(jnp.float32))                      # [in, B]
    w1t = jnp.zeros((hidden_p, in_size), jnp.float32).at[:hidden, :].set(
        jnp.transpose(w1).astype(jnp.float32))                     # [hid_p, in]
    b1c = jnp.zeros((hidden_p, 1), jnp.float32).at[:hidden, 0].set(
        b1.reshape(-1).astype(jnp.float32))                        # [hid_p, 1]
    w2c = jnp.zeros((hidden_p, 1), jnp.float32).at[:hidden, 0].set(
        w2.reshape(-1).astype(jnp.float32))                        # [hid_p, 1]
    b2s = b2.reshape(-1).astype(jnp.float32)                       # (1,) scalar

    out_t = pl.pallas_call(
        valuenet_kernel,
        out_shape=jax.ShapeDtypeStruct((1, B), jnp.float32),
        grid=grid,
        in_specs=[
            pl.BlockSpec((in_size, tm), lambda i: (0, i)),        # x^T tile (pipelined)
            pl.BlockSpec((hidden_p, in_size), lambda i: (0, 0)),  # W1^T resident
            pl.BlockSpec((hidden_p, 1), lambda i: (0, 0)),        # b1 column resident
            pl.BlockSpec((hidden_p, 1), lambda i: (0, 0)),        # w2 column resident
            pl.BlockSpec(memory_space=pltpu.MemorySpace.SMEM),    # b2 scalar in SMEM
        ],
        out_specs=pl.BlockSpec((1, tm), lambda i: (0, i)),        # lane-dense output
        compiler_params=pltpu.CompilerParams(
            dimension_semantics=("parallel",)),                   # megacore-friendly
    )(xt, w1t, b1c, w2c, b2s)

    return out_t.reshape(B, 1)                                    # free reshape


if __name__ == "__main__":
    # Module config: ValueNet(input_size, output_size)
    input_size = 8
    hidden_size = int(input_size * 10)   # fc1 out = 80
    output_size = 1

    key = jax.random.PRNGKey(0)
    kx, k1, k2, k3, k4, kb = jax.random.split(key, 6)

    # PyTorch-style init scale: U(-1/sqrt(fan_in), 1/sqrt(fan_in)).
    lim1 = 1.0 / jnp.sqrt(jnp.float32(input_size))
    lim2 = 1.0 / jnp.sqrt(jnp.float32(hidden_size))
    w1 = jax.random.uniform(k1, (input_size, hidden_size), jnp.float32, -lim1, lim1)
    b1 = jax.random.uniform(k2, (1, hidden_size), jnp.float32, -lim1, lim1)
    w2 = jax.random.uniform(k3, (hidden_size, output_size), jnp.float32, -lim2, lim2)
    b2 = jax.random.uniform(k4, (1, output_size), jnp.float32, -lim2, lim2)

    def ref_fn(xv):
        return jnp.maximum(xv @ w1 + b1, 0.0) @ w2 + b2

    # Small batch: single lane-dense tile, grid=(1,).
    x_small = jax.random.normal(kx, (4, input_size), jnp.float32)
    out_small = jax.block_until_ready(valuenet_forward(x_small, w1, b1, w2, b2))
    assert out_small.shape == (4, output_size)
    assert jnp.allclose(out_small, ref_fn(x_small), atol=1e-5, rtol=1e-5)

    # Larger, non-tile-multiple batch: two "parallel" grid steps with a ragged
    # last block (no wrapper batch pad), pure-f32 path.
    x_big = jax.random.normal(kb, (1000, input_size), jnp.float32)
    out_big = jax.block_until_ready(valuenet_forward(x_big, w1, b1, w2, b2))
    assert out_big.shape == (1000, output_size)
    assert jnp.allclose(out_big, ref_fn(x_big), atol=1e-5, rtol=1e-5)

    print("KERNEL_OK")
</pallas_src>

<mosaic_0001>
module attributes {stable_mosaic.version = 11 : i64} {
  func.func @valuenet_kernel(%arg0: i32, %arg1: memref<8x128xf32, #tpu.memory_space<vmem>>, %arg2: memref<80x8xf32, #tpu.memory_space<vmem>>, %arg3: memref<80x1xf32, #tpu.memory_space<vmem>>, %arg4: memref<80x1xf32, #tpu.memory_space<vmem>>, %arg5: memref<1xf32, #tpu.memory_space<smem>>, %arg6: memref<1x128xf32, #tpu.memory_space<vmem>>) attributes {dimension_semantics = [#tpu.dimension_semantics<parallel>], iteration_bounds = array<i64: 1>, scalar_prefetch = 0 : i64, scratch_operands = 0 : i64, tpu.core_type = #tpu.core_type<tc>, window_params = [{transform_indices = @transform_0, window_bounds = array<i64: 8, 128>}, {pipeline_mode = #tpu.pipeline_mode<synchronous>, transform_indices = @transform_1, window_bounds = array<i64: 80, 8>}, {pipeline_mode = #tpu.pipeline_mode<synchronous>, transform_indices = @transform_2, window_bounds = array<i64: 80, 1>}, {pipeline_mode = #tpu.pipeline_mode<synchronous>, transform_indices = @transform_3, window_bounds = array<i64: 80, 1>}, {transform_indices = @transform_4, window_bounds = array<i64: 1>}, {transform_indices = @transform_5, window_bounds = array<i64: 1, 128>}]} {
    %c0 = arith.constant 0 : index
    %c0_0 = arith.constant 0 : index
    %0 = vector.load %arg2[%c0, %c0_0] : memref<80x8xf32, #tpu.memory_space<vmem>>, vector<80x8xf32>
    %c0_1 = arith.constant 0 : index
    %c0_2 = arith.constant 0 : index
    %1 = vector.load %arg1[%c0_1, %c0_2] : memref<8x128xf32, #tpu.memory_space<vmem>>, vector<8x128xf32>
    %cst = arith.constant dense<0.000000e+00> : vector<80x128xf32>
    %2 = tpu.matmul %0, %1, %cst {dimension_numbers = #tpu.dot_dimension_numbers<[1], [0], [0], [1], [0, 0, 1, 1], [], []>} : vector<80x8xf32>, vector<8x128xf32>, vector<80x128xf32> -> vector<80x128xf32>
    %c0_3 = arith.constant 0 : index
    %c0_4 = arith.constant 0 : index
    %3 = vector.load %arg3[%c0_3, %c0_4] : memref<80x1xf32, #tpu.memory_space<vmem>>, vector<80x1xf32>
    %4 = vector.broadcast %3 : vector<80x1xf32> to vector<80x128xf32>
    %5 = arith.addf %2, %4 : vector<80x128xf32>
    %cst_5 = arith.constant 0.000000e+00 : f32
    %6 = vector.broadcast %cst_5 : f32 to vector<80x128xf32>
    %7 = arith.maximumf %5, %6 : vector<80x128xf32>
    %c0_6 = arith.constant 0 : index
    %c0_7 = arith.constant 0 : index
    %8 = vector.load %arg4[%c0_6, %c0_7] : memref<80x1xf32, #tpu.memory_space<vmem>>, vector<80x1xf32>
    %9 = vector.broadcast %8 : vector<80x1xf32> to vector<80x128xf32>
    %10 = arith.mulf %7, %9 : vector<80x128xf32>
    %cst_8 = arith.constant dense<0.000000e+00> : vector<128xf32>
    %11 = vector.multi_reduction <add>, %10, %cst_8 [0] : vector<80x128xf32> to vector<128xf32>
    %12 = vector.shape_cast %11 : vector<128xf32> to vector<1x128xf32>
    %c0_9 = arith.constant 0 : index
    %13 = memref.load %arg5[%c0_9] : memref<1xf32, #tpu.memory_space<smem>>
    %14 = vector.broadcast %13 : f32 to vector<1x128xf32>
    %15 = arith.addf %12, %14 : vector<1x128xf32>
    %c0_10 = arith.constant 0 : index
    %c0_11 = arith.constant 0 : index
    %16 = vector.load %arg6[%c0_10, %c0_11] : memref<1x128xf32, #tpu.memory_space<vmem>>, vector<1x128xf32>
    tpu.vector_store %arg6[%c0_10, %c0_11], %15 {strides = array<i32>} : memref<1x128xf32, #tpu.memory_space<vmem>>, vector<1x128xf32>,
    return
  }
  func.func @transform_0(%arg0: i32) -> (i32, i32) {
    %c0_i32 = arith.constant 0 : i32
    %c0_i32_0 = arith.constant 0 : i32
    return %c0_i32, %arg0 : i32, i32
  }
  func.func @transform_1(%arg0: i32) -> (i32, i32) {
    %c0_i32 = arith.constant 0 : i32
    %c0_i32_0 = arith.constant 0 : i32
    %c0_i32_1 = arith.constant 0 : i32
    return %c0_i32, %c0_i32_0 : i32, i32
  }
  func.func @transform_2(%arg0: i32) -> (i32, i32) {
    %c0_i32 = arith.constant 0 : i32
    %c0_i32_0 = arith.constant 0 : i32
    %c0_i32_1 = arith.constant 0 : i32
    return %c0_i32, %c0_i32_0 : i32, i32
  }
  func.func @transform_3(%arg0: i32) -> (i32, i32) {
    %c0_i32 = arith.constant 0 : i32
    %c0_i32_0 = arith.constant 0 : i32
    %c0_i32_1 = arith.constant 0 : i32
    return %c0_i32, %c0_i32_0 : i32, i32
  }
  func.func @transform_4(%arg0: i32) -> i32 {
    %c0_i32 = arith.constant 0 : i32
    %c0_i32_0 = arith.constant 0 : i32
    return %c0_i32 : i32
  }
  func.func @transform_5(%arg0: i32) -> (i32, i32) {
    %c0_i32 = arith.constant 0 : i32
    %c0_i32_0 = arith.constant 0 : i32
    return %c0_i32, %arg0 : i32, i32
  }
}

</mosaic_0001>

<bundles_post_ra>
// kernel: tpu_custom_call.1
= control target key start
LH: loop header
LB: loop body
LE: loop exit
PB: predicated region body
PF: predicated region fallthrough
CT: control target
= control target key end

     0   :  { %vm93_vm0 = vcmask 64512   ;;  %v420_v12 = vmov 0   ;;  %s570_s0 = inlined_call_operand.vmem [shape: f32[8,4], index: 0, kind: input, shape index: {}]   ;;  %s571_s1 = inlined_call_operand.vmem [shape: f32[80,8], index: 1, kind: input, shape index: {}]   ;;  %s572_s2 = inlined_call_operand.vmem [shape: f32[80,1], index: 2, kind: input, shape index: {}]   ;;  %s573_s3 = inlined_call_operand.vmem [shape: f32[80,1], index: 3, kind: input, shape index: {}]   ;;  %s574_s4 = inlined_call_operand.<no memory space> [shape: f32[1], index: 4, kind: input, shape index: {}]   ;;  %s575_s5 = inlined_call_operand.hbm [shape: f32[1,4], index: 5, kind: output, shape index: {}]  }
   0x1   :  { %v32_v0 = vld [vmem:[%s570_s0] sm:$0xff]  ;;  %v28_v2 = vld [vmem:[%s571_s1 + $0x30] sm:$0xff]  ;;  %v23_v3 = vld [vmem:[%s571_s1 + $0x8] sm:$0xff]  ;;  %394 = vset.pattern.permute.xlu0 %v420_v12  ;;  %395 = vset.pattern.permute.xlu1 %v420_v12 }
   0x2   :  { %v22_v1 = vld [vmem:[%s571_s1] sm:$0xff]  ;;  %373 = vmatprep.subr.mxu0 %v32_v0  ;;  %390 = vmatprep.subr.mxu1 %v32_v0  ;;  %v29_v4 = vld [vmem:[%s571_s1 + $0x38] sm:$0xff]  ;;  %v24_v5 = vld [vmem:[%s571_s1 + $0x10] sm:$0xff] }
   0x3   :  { %374 = vmatpush3.msra.mxu0 %v32_v0  ;;  %391 = vmatpush3.msra.mxu1 %v32_v0  ;;  %v30_v6 = vld [vmem:[%s571_s1 + $0x40] sm:$0xff]  ;;  %v35_v8 = vld [vmem:[%s572_s2 + $0x10] sm:$0xff]  ;;  %v25_v9 = vld [vmem:[%s571_s1 + $0x18] sm:$0xff] }
   0x4   :  { %375 = vmatprep.mubr.msk.f32.mxu0 %vm93_vm0, %v22_v1  ;;  %384 = vmatprep.mubr.msk.f32.mxu1 %vm93_vm0, %v28_v2  ;;  %v33_v7 = vld [vmem:[%s572_s2] sm:$0xff]  ;;  %v31_v10 = vld [vmem:[%s571_s1 + $0x48] sm:$0xff]  ;;  %v36_v14 = vld [vmem:[%s572_s2 + $0x18] sm:$0xff] }
   0x5   :  { %376 = vmatmul.mubr.msk.f32.vlgmr.msra.gmra.mrb[0].mxu0 %vm93_vm0, %v23_v3  ;;  %385 = vmatmul.mubr.msk.f32.vlgmr.msra.gmra.mrb[0].mxu1 %vm93_vm0, %v29_v4  ;;  %v26_v11 = vld [vmem:[%s571_s1 + $0x20] sm:$0xff]  ;;  %v34_v13 = vld [vmem:[%s572_s2 + $0x8] sm:$0xff] }
   0x6   :  { %378 = vmatprep.mubr.msk.f32.mxu0 %vm93_vm0, %v24_v5  ;;  %387 = vmatprep.mubr.msk.f32.mxu1 %vm93_vm0, %v30_v6  ;;  %v27_v15 = vld [vmem:[%s571_s1 + $0x28] sm:$0xff] }
   0x7   :  { %45 = vperm.xlu0 %394, %v33_v7   ;;  %55 = vperm.xlu1 %395, %v35_v8  }
   0x9   :  { %379 = vmatmul.mubr.msk.f32.gmra.mrb[2].mxu0 %vm93_vm0, %v25_v9  ;;  %388 = vmatmul.mubr.msk.f32.gmra.mrb[2].mxu1 %vm93_vm0, %v31_v10 }
   0xa   :  { %381 = vmatprep.mubr.msk.f32.mxu0 %vm93_vm0, %v26_v11 }
   0xb   :  { %11 = vsyncpa [#allocation4], 0  ;;  %50 = vperm.xlu0 %394, %v34_v13   ;;  %60 = vperm.xlu1 %395, %v36_v14   ;;  %v249_v16 = vld [vmem:[%s573_s3] sm:$0xff]  ;;  %v250_v17 = vld [vmem:[%s573_s3 + $0x8] sm:$0xff]  ;;  %s421_s27 = smov [#allocation3]  }
   0xc   :  { %v37_v18 = vld [vmem:[%s572_s2 + $0x20] sm:$0xff]  ;;  %v251_v19 = vld [vmem:[%s573_s3 + $0x10] sm:$0xff]  ;;  %v38_v20 = vld [vmem:[%s572_s2 + $0x28] sm:$0xff]  ;;  %s344_s1 = sshll.u32 %s421_s27, 4  ;;  %s345_s1 = int_to_ptr.vmem [resolvable:$true] %s344_s1 }
   0xd   :  { %382 = vmatmul.mubr.msk.f32.gmra.mrb[4].mxu0 %vm93_vm0, %v27_v15  ;;  %v252_v21 = vld [vmem:[%s573_s3 + $0x18] sm:$0xff]  ;;  %v39_v22 = vld [vmem:[%s572_s2 + $0x30] sm:$0xff]  ;;  %v253_v23 = vld [vmem:[%s573_s3 + $0x20] sm:$0xff]  ;;  %s396_s0 = scalar_lea.vmem %s345_s1, 16  ;;  %s400_s28 = scalar_lea.vmem %s345_s1, 32 }
   0xe   :  { %v40_v24 = vld [vmem:[%s572_s2 + $0x38] sm:$0xff]  ;;  %v254_v25 = vld [vmem:[%s573_s3 + $0x28] sm:$0xff]  ;;  %v41_v26 = vld [vmem:[%s572_s2 + $0x40] sm:$0xff]  ;;  %p397_p0 = scmp.ne.s32.totalorder %s345_s1, %s396_s0  ;;  %p401_p1 = scmp.lt.s32.totalorder %s345_s1, %s345_s1 }
   0xf   :  { %261 = vperm.xlu0 %394, %v249_v16   ;;  %266 = vperm.xlu1 %395, %v250_v17   ;;  %v255_v27 = vld [vmem:[%s573_s3 + $0x30] sm:$0xff]  ;;  %v42_v28 = vld [vmem:[%s572_s2 + $0x48] sm:$0xff]  ;;  %v256_v29 = vld [vmem:[%s573_s3 + $0x38] sm:$0xff]  ;;  %p402_p2 = scmp.lt.s32.totalorder %s400_s28, %s396_s0 }
  0x10   :  { %v257_v30 = vld [vmem:[%s573_s3 + $0x40] sm:$0xff]  ;;  %v258_v31 = vld [vmem:[%s573_s3 + $0x48] sm:$0xff] }
  0x11   :  { %p403_p3 = por %p402_p2, %p401_p1 }
  0x13   :  { %65 = vperm.xlu0 %394, %v37_v18   ;;  %271 = vperm.xlu1 %395, %v251_v19   ;;  %p404_p4 = pnand %p403_p3, %p397_p0 }
  0x17   :  { %70 = vperm.xlu0 %394, %v38_v20   ;;  %276 = vperm.xlu1 %395, %v252_v21  }
  0x1b   :  { %75 = vperm.xlu0 %394, %v39_v22   ;;  %281 = vperm.xlu1 %395, %v253_v23  }
  0x1f   :  { %80 = vperm.xlu0 %394, %v40_v24   ;;  %286 = vperm.xlu1 %395, %v254_v25  }
  0x23   :  { %85 = vperm.xlu0 %394, %v41_v26   ;;  %291 = vperm.xlu1 %395, %v255_v27  }
  0x27   :  { %90 = vperm.xlu0 %394, %v42_v28   ;;  %296 = vperm.xlu1 %395, %v256_v29  }
  0x2b   :  { %301 = vperm.xlu0 %394, %v257_v30   ;;  %306 = vperm.xlu1 %395, %v258_v31  }
  0x86   :  { %v46_v32 = vpop.permute.xlu0 %45  ;;  %v56_v33 = vpop.permute.xlu1 %55 }
  0x8a   :  { %v51_v34 = vpop.permute.xlu0 %50  ;;  %v61_v35 = vpop.permute.xlu1 %60 }
  0x8e   :  { %v262_v36 = vpop.permute.xlu0 %261  ;;  %v267_v37 = vpop.permute.xlu1 %266 }
  0x92   :  { %v66_v38 = vpop.permute.xlu0 %65  ;;  %v272_v39 = vpop.permute.xlu1 %271 }
  0x96   :  { %v71_v40 = vpop.permute.xlu0 %70  ;;  %v277_v41 = vpop.permute.xlu1 %276 }
  0x9a   :  { %v76_v42 = vpop.permute.xlu0 %75  ;;  %v282_v43 = vpop.permute.xlu1 %281 }
  0x9e   :  { %v81_v50 = vpop.permute.xlu0 %80  ;;  %v287_v51 = vpop.permute.xlu1 %286 }
  0xa2   :  { %v86_v2 = vpop.permute.xlu0 %85  ;;  %v292_v8 = vpop.permute.xlu1 %291 }
  0xa6   :  { %v91_v18 = vpop.permute.xlu0 %90  ;;  %v297_v23 = vpop.permute.xlu1 %296 }
  0xaa   :  { %v302_v30 = vpop.permute.xlu0 %301 }
  0xd8   :  { %v377_v44 = vpop.f32.mrb[0].mxu0  ;;  %v386_v45 = vpop.f32.mrb[0].mxu1 }
  0xd9   :  { %v196_v46 = vadd.f32 %v377_v44, %v51_v34  ;;  %v190_v47 = vpop.f32.mrb[1].mxu0  ;;  %v220_v48 = vpop.f32.mrb[1].mxu1  ;;  %v226_v9 = vadd.f32 %v386_v45, %v81_v50 }
  0xda   :  { %v191_v49 = vadd.f32 %v190_v47, %v46_v32  ;;  %v221_v5 = vadd.f32 %v220_v48, %v76_v42  ;;  %v335_v42 = vstv %s574_s4 }
  0xdb   :  { %v240_v52 = vmax.f32 %v196_v46, 0.0  ;;  %v246_v19 = vmax.f32 %v226_v9, 0.0 }
  0xdc   :  { %v239_v53 = vmax.f32 %v191_v49, 0.0  ;;  %v380_v54 = vpop.f32.mrb[2].mxu0  ;;  %v389_v55 = vpop.f32.mrb[2].mxu1  ;;  %v245_v14 = vmax.f32 %v221_v5, 0.0 }
  0xdd   :  { %v310_v56 = vmul.f32 %v267_v37, %v240_v52  ;;  %v206_v57 = vadd.f32 %v380_v54, %v61_v35  ;;  %v200_v58 = vpop.f32.mrb[3].mxu0  ;;  %v230_v59 = vpop.f32.mrb[3].mxu1  ;;  %v236_v20 = vadd.f32 %v389_v55, %v91_v18  ;;  %v316_v27 = vmul.f32 %v297_v23, %v246_v19 }
  0xde   :  { %v309_v60 = vmul.f32 %v262_v36, %v239_v53  ;;  %v201_v61 = vadd.f32 %v200_v58, %v56_v33  ;;  %v231_v15 = vadd.f32 %v230_v59, %v86_v2  ;;  %v315_v24 = vmul.f32 %v292_v8, %v245_v14  ;;  %v307_v33 = vpop.permute.xlu1 %306 }
  0xdf   :  { %v242_v63 = vmax.f32 %v206_v57, 0.0  ;;  %v248_v28 = vmax.f32 %v236_v20, 0.0 }
  0xe0   :  { %v319_v62 = vadd.f32 %v310_v56, %v309_v60  ;;  %v241_v0 = vmax.f32 %v201_v61, 0.0  ;;  %v383_v1 = vpop.f32.mrb[4].mxu0  ;;  %v247_v25 = vmax.f32 %v231_v15, 0.0 }
  0xe1   :  { %v216_v3 = vadd.f32 %v383_v1, %v71_v40  ;;  %v210_v4 = vpop.f32.mrb[5].mxu0  ;;  %v312_v10 = vmul.f32 %v277_v41, %v242_v63  ;;  %v318_v34 = vmul.f32 %v307_v33, %v248_v28 }
  0xe2   :  { %v311_v6 = vmul.f32 %v272_v39, %v241_v0  ;;  %v211_v7 = vadd.f32 %v210_v4, %v66_v38  ;;  %v317_v31 = vmul.f32 %v302_v30, %v247_v25 }
  0xe3   :  { %v244_v12 = vmax.f32 %v216_v3, 0.0 }
  0xe4   :  { %v320_v11 = vadd.f32 %v319_v62, %v311_v6  ;;  %v243_v13 = vmax.f32 %v211_v7, 0.0 }
  0xe5   :  { %v314_v21 = vmul.f32 %v287_v51, %v244_v12 }
  0xe6   :  { %v313_v16 = vmul.f32 %v282_v43, %v243_v13  ;;  %v321_v17 = vadd.f32 %v320_v11, %v312_v10 }
  0xe8   :  { %v322_v22 = vadd.f32 %v321_v17, %v313_v16 }
  0xea   :  { %v323_v26 = vadd.f32 %v322_v22, %v314_v21 }
  0xec   :  { %v324_v29 = vadd.f32 %v323_v26, %v315_v24 }
  0xee   :  { %v325_v32 = vadd.f32 %v324_v29, %v316_v27 }
  0xf0   :  { %v326_v35 = vadd.f32 %v325_v32, %v317_v31 }
  0xf2   :  { %v327_v36 = vadd.f32 %v326_v35, %v318_v34 }
  0xf4   :  { %v328_v37 = vrot.slane %v327_v36, 4 }
  0xf6   :  { %v329_v38 = vadd.f32 %v328_v37, %v327_v36 }
  0xf8   :  { %v330_v39 = vrot.slane %v329_v38, 2 }
  0xfa   :  { %v331_v40 = vadd.f32 %v330_v39, %v329_v38 }
  0xfc   :  { %v332_v41 = vrot.slane %v331_v40, 1 }
  0xfe   :  { %v333_v43 = vadd.f32 %v332_v41, %v331_v40 }
 0x100   :  { %v336_v44 = vadd.f32 %v335_v42, %v333_v43 }
 0x102   :  { %337 = vst [vmem:[#allocation3] sm:$0x1] %v336_v44 }
 0x103   :  { %407 = shalt.err (!%p404_p4)
}
 0x104   :  { %s408_s6 = scalar_lea.hbm %s575_s5, 16 }
 0x105   :  { %p409_p5 = scmp.ne.s32.totalorder %s575_s5, %s408_s6  ;;  %p412_p6 = scmp.lt.u32.totalorder %s408_s6, %s575_s5 }
 0x107   :  { %p414_p7 = pnand %p412_p6, %p409_p5 }
 0x109   :  { %417 = shalt.err (!%p414_p7)
}
 0x10a   :  { %347 = dma.vmem_to_hbm [thread:$0]  %s345_s1, 16, %s575_s5, [#allocation4]  }
 0x10b   :  { %418 = dma.done.wait [#allocation4], 16  }
 0x10c   :  { %419 = vsyncadd [#allocation4], 4294967280 }
 0x10d   :  { %351 = vsyncpa [#allocation4], 1 }

</bundles_post_ra>
